<compile_context>
chip_gen: v6e
topology: v6e:2x2x1
jax: 0.10.0
libtpu: 0.0.40
codegen_flags: <defaults>
</compile_context>

<pallas_src>
import jax
import jax.numpy as jnp
from jax.experimental import pallas as pl
from jax.experimental.pallas import tpu as pltpu


def _round_up(x, m):
    return ((x + m - 1) // m) * m


def _multiply_c_kernel(xi_ref, xj_ref, e_ref, v_ref, w_ref, o_ref):
    # Row refs: (tile, Dp) lane-dense packed layout.  w_ref: (3, Dp, Dp) block-diagonal
    # packed weights [W_xj^T, W_e^T, W_v^T].  Three accumulated MXU dots (no concat temp).
    acc = jnp.dot(xj_ref[...], w_ref[0], preferred_element_type=jnp.float32)
    acc = acc + jnp.dot(e_ref[...], w_ref[1], preferred_element_type=jnp.float32)
    acc = acc + jnp.dot(v_ref[...], w_ref[2], preferred_element_type=jnp.float32)
    o_ref[...] = jnp.tanh(acc * xi_ref[...].astype(jnp.float32)).astype(o_ref.dtype)


def pack_weight(weight):
    """Pack a torch-layout Linear weight (D, 3*D) into (3, Dp, Dp) block-diagonal form,
    Dp = pack*D with pack = 128 // D (lane packing).  Call ONCE at module init."""
    D = weight.shape[0]
    assert weight.shape == (D, 3 * D), "Multiply_C expects k_s = 3 (concat aggregation)"
    pack = 128 // D if (D < 128 and 128 % D == 0) else 1
    w_t3 = weight.T.reshape(3, D, D)                  # [W_xj^T, W_e^T, W_v^T]
    if pack == 1:
        return w_t3
    eye_p = jnp.eye(pack, dtype=weight.dtype)
    return jnp.stack([jnp.kron(eye_p, w_t3[s]) for s in range(3)], axis=0)  # (3, Dp, Dp)


def multiply_c(x_i, x_j, e_ij, v, w_packed, *, tile_msgs=8192, compute_dtype=None):
    """x_i/x_j/e_ij/v: (N, D).  w_packed: (3, Dp, Dp) from pack_weight().  Returns (N, D)."""
    N, D = x_i.shape
    Dp = w_packed.shape[-1]
    assert w_packed.shape == (3, Dp, Dp) and Dp % D == 0
    pack = Dp // D
    out_dtype = x_i.dtype

    # Pad only to a multiple of `pack` (<= pack-1 rows); ragged last *tile* is handled
    # by Pallas (masked writeback), so there is no pad-to-grid / out[:N] HBM pass.
    N_pad = _round_up(N, pack)

    def pack_rows(a):
        if N_pad != N:
            a = jnp.pad(a, ((0, N_pad - N), (0, 0)))
        a = a.reshape(N_pad // pack, Dp)              # contiguous reshape: free
        if compute_dtype is not None:
            a = a.astype(compute_dtype)
        return a

    xi_p, xj_p, e_p, v_p = (pack_rows(a) for a in (x_i, x_j, e_ij, v))
    if compute_dtype is not None:
        w_packed = w_packed.astype(compute_dtype)

    n_rows = N_pad // pack

    # Tile selection: large, sublane-aligned tiles to amortize ~0.35 us/step.  No forced
    # halving (v5e/v6e are single-TensorCore); a single full-extent block when it fits.
    tile_rows = max(8, (max(tile_msgs // pack, 8) // 8) * 8)
    tn_p = n_rows if n_rows <= tile_rows else tile_rows
    grid = pl.cdiv(n_rows, tn_p)

    # v7x: the 'parallel' grid axis is sharded across 2 TensorCores; prefer an even
    # number of equal-ish steps so neither core gets a ~1.5x tail.
    if grid >= 3 and grid % 2 == 1:
        cand = _round_up(pl.cdiv(n_rows, grid + 1), 8)
        if cand >= 8 and pl.cdiv(n_rows, cand) % 2 == 0:
            tn_p = cand
            grid = pl.cdiv(n_rows, tn_p)

    row_spec = pl.BlockSpec((tn_p, Dp), lambda i: (i, 0))
    w_spec = pl.BlockSpec((3, Dp, Dp), lambda i: (0, 0, 0))     # resident packed weight

    in_itemsize = jnp.dtype(xi_p.dtype).itemsize
    out_itemsize = jnp.dtype(out_dtype).itemsize
    cost = pl.CostEstimate(
        flops=2 * n_rows * 3 * Dp * Dp,                         # actual (inflated) contraction
        transcendentals=n_rows * Dp,
        bytes_accessed=(4 * n_rows * Dp + 3 * Dp * Dp) * in_itemsize
                       + n_rows * Dp * out_itemsize,
    )

    out_p = pl.pallas_call(
        _multiply_c_kernel,
        out_shape=jax.ShapeDtypeStruct((n_rows, Dp), out_dtype),
        grid_spec=pltpu.PrefetchScalarGridSpec(
            num_scalar_prefetch=0,
            grid=(grid,),
            in_specs=[row_spec, row_spec, row_spec, row_spec, w_spec],
            out_specs=row_spec,
        ),
        compiler_params=pltpu.CompilerParams(
            dimension_semantics=("parallel",)),
        cost_estimate=cost,
    )(xi_p, xj_p, e_p, v_p, w_packed)

    out = out_p.reshape(N_pad, D)
    if N_pad != N:
        out = out[:N]
    return out


def multiply_c_ref(x_i, x_j, e_ij, v, weight):
    k = jnp.concatenate([x_j, e_ij, v], axis=-1)      # agg_k = concat
    return jnp.tanh((k @ weight.T) * x_i)


if __name__ == "__main__":
    # Small shapes: N=128 messages, in_size=32, k_s=3 (concat aggregation).
    N, D, K_S = 128, 32, 3
    key = jax.random.PRNGKey(0)
    k0, k1, k2, k3, kw = jax.random.split(key, 5)

    x_i = jax.random.normal(k0, (N, D), dtype=jnp.float32)
    x_j = jax.random.normal(k1, (N, D), dtype=jnp.float32)
    e_ij = jax.random.normal(k2, (N, D), dtype=jnp.float32)
    v = jax.random.normal(k3, (N, D), dtype=jnp.float32)

    # Deterministic Linear(in_size*k_s, in_size, bias=False) weight, torch-style (D, D*k_s).
    bound = 1.0 / jnp.sqrt(D * K_S)
    weight = jax.random.uniform(kw, (D, D * K_S), minval=-bound, maxval=bound,
                                dtype=jnp.float32)

    # Pack the weight once ("module init"), reuse across calls.
    w_packed = pack_weight(weight)

    out = multiply_c(x_i, x_j, e_ij, v, w_packed)
    out = jax.block_until_ready(out)

    ref = multiply_c_ref(x_i, x_j, e_ij, v, weight)
    assert out.shape == (N, D)
    assert jnp.allclose(out, ref, atol=1e-5, rtol=1e-5)

    # Also exercise the non-divisible path (N not a multiple of pack, ragged last tile).
    N2 = 99
    out2 = multiply_c(x_i[:N2], x_j[:N2], e_ij[:N2], v[:N2], w_packed, tile_msgs=64)
    out2 = jax.block_until_ready(out2)
    assert out2.shape == (N2, D)
    assert jnp.allclose(out2, ref[:N2], atol=1e-5, rtol=1e-5)

    print("KERNEL_OK")
</pallas_src>

<mosaic_0001>
module attributes {stable_mosaic.version = 11 : i64} {
  func.func @_multiply_c_kernel(%arg0: i32, %arg1: memref<32x128xf32, #tpu.memory_space<vmem>>, %arg2: memref<32x128xf32, #tpu.memory_space<vmem>>, %arg3: memref<32x128xf32, #tpu.memory_space<vmem>>, %arg4: memref<32x128xf32, #tpu.memory_space<vmem>>, %arg5: memref<3x128x128xf32, #tpu.memory_space<vmem>>, %arg6: memref<32x128xf32, #tpu.memory_space<vmem>>) attributes {dimension_semantics = [#tpu.dimension_semantics<parallel>], iteration_bounds = array<i64: 1>, scalar_prefetch = 0 : i64, scratch_operands = 0 : i64, tpu.core_type = #tpu.core_type<tc>, window_params = [{transform_indices = @transform_0, window_bounds = array<i64: 32, 128>}, {transform_indices = @transform_1, window_bounds = array<i64: 32, 128>}, {transform_indices = @transform_2, window_bounds = array<i64: 32, 128>}, {transform_indices = @transform_3, window_bounds = array<i64: 32, 128>}, {pipeline_mode = #tpu.pipeline_mode<synchronous>, transform_indices = @transform_4, window_bounds = array<i64: 3, 128, 128>}, {transform_indices = @transform_5, window_bounds = array<i64: 32, 128>}]} {
    %c0 = arith.constant 0 : index
    %c0_0 = arith.constant 0 : index
    %0 = vector.load %arg2[%c0, %c0_0] : memref<32x128xf32, #tpu.memory_space<vmem>>, vector<32x128xf32>
    %c0_1 = arith.constant 0 : index
    %c0_2 = arith.constant 0 : index
    %c0_3 = arith.constant 0 : index
    %1 = vector.load %arg5[%c0_1, %c0_2, %c0_3] : memref<3x128x128xf32, #tpu.memory_space<vmem>>, vector<1x128x128xf32>
    %2 = vector.shape_cast %1 : vector<1x128x128xf32> to vector<128x128xf32>
    %cst = arith.constant dense<0.000000e+00> : vector<32x128xf32>
    %3 = tpu.matmul %0, %2, %cst {dimension_numbers = #tpu.dot_dimension_numbers<[1], [0], [0], [1], [0, 0, 1, 1], [], []>} : vector<32x128xf32>, vector<128x128xf32>, vector<32x128xf32> -> vector<32x128xf32>
    %c0_4 = arith.constant 0 : index
    %c0_5 = arith.constant 0 : index
    %4 = vector.load %arg3[%c0_4, %c0_5] : memref<32x128xf32, #tpu.memory_space<vmem>>, vector<32x128xf32>
    %c1 = arith.constant 1 : index
    %c0_6 = arith.constant 0 : index
    %c0_7 = arith.constant 0 : index
    %5 = vector.load %arg5[%c1, %c0_6, %c0_7] : memref<3x128x128xf32, #tpu.memory_space<vmem>>, vector<1x128x128xf32>
    %6 = vector.shape_cast %5 : vector<1x128x128xf32> to vector<128x128xf32>
    %cst_8 = arith.constant dense<0.000000e+00> : vector<32x128xf32>
    %7 = tpu.matmul %4, %6, %cst_8 {dimension_numbers = #tpu.dot_dimension_numbers<[1], [0], [0], [1], [0, 0, 1, 1], [], []>} : vector<32x128xf32>, vector<128x128xf32>, vector<32x128xf32> -> vector<32x128xf32>
    %8 = arith.addf %3, %7 : vector<32x128xf32>
    %c0_9 = arith.constant 0 : index
    %c0_10 = arith.constant 0 : index
    %9 = vector.load %arg4[%c0_9, %c0_10] : memref<32x128xf32, #tpu.memory_space<vmem>>, vector<32x128xf32>
    %c2 = arith.constant 2 : index
    %c0_11 = arith.constant 0 : index
    %c0_12 = arith.constant 0 : index
    %10 = vector.load %arg5[%c2, %c0_11, %c0_12] : memref<3x128x128xf32, #tpu.memory_space<vmem>>, vector<1x128x128xf32>
    %11 = vector.shape_cast %10 : vector<1x128x128xf32> to vector<128x128xf32>
    %cst_13 = arith.constant dense<0.000000e+00> : vector<32x128xf32>
    %12 = tpu.matmul %9, %11, %cst_13 {dimension_numbers = #tpu.dot_dimension_numbers<[1], [0], [0], [1], [0, 0, 1, 1], [], []>} : vector<32x128xf32>, vector<128x128xf32>, vector<32x128xf32> -> vector<32x128xf32>
    %13 = arith.addf %8, %12 : vector<32x128xf32>
    %c0_14 = arith.constant 0 : index
    %c0_15 = arith.constant 0 : index
    %14 = vector.load %arg1[%c0_14, %c0_15] : memref<32x128xf32, #tpu.memory_space<vmem>>, vector<32x128xf32>
    %15 = arith.mulf %13, %14 : vector<32x128xf32>
    %16 = math.tanh %15 : vector<32x128xf32>
    %c0_16 = arith.constant 0 : index
    %c0_17 = arith.constant 0 : index
    %17 = vector.load %arg6[%c0_16, %c0_17] : memref<32x128xf32, #tpu.memory_space<vmem>>, vector<32x128xf32>
    tpu.vector_store %arg6[%c0_16, %c0_17], %16 {strides = array<i32>} : memref<32x128xf32, #tpu.memory_space<vmem>>, vector<32x128xf32>,
    return
  }
  func.func @transform_0(%arg0: i32) -> (i32, i32) {
    %c0_i32 = arith.constant 0 : i32
    %c0_i32_0 = arith.constant 0 : i32
    return %arg0, %c0_i32 : i32, i32
  }
  func.func @transform_1(%arg0: i32) -> (i32, i32) {
    %c0_i32 = arith.constant 0 : i32
    %c0_i32_0 = arith.constant 0 : i32
    return %arg0, %c0_i32 : i32, i32
  }
  func.func @transform_2(%arg0: i32) -> (i32, i32) {
    %c0_i32 = arith.constant 0 : i32
    %c0_i32_0 = arith.constant 0 : i32
    return %arg0, %c0_i32 : i32, i32
  }
  func.func @transform_3(%arg0: i32) -> (i32, i32) {
    %c0_i32 = arith.constant 0 : i32
    %c0_i32_0 = arith.constant 0 : i32
    return %arg0, %c0_i32 : i32, i32
  }
  func.func @transform_4(%arg0: i32) -> (i32, i32, i32) {
    %c0_i32 = arith.constant 0 : i32
    %c0_i32_0 = arith.constant 0 : i32
    %c0_i32_1 = arith.constant 0 : i32
    %c0_i32_2 = arith.constant 0 : i32
    return %c0_i32, %c0_i32_0, %c0_i32_1 : i32, i32, i32
  }
  func.func @transform_5(%arg0: i32) -> (i32, i32) {
    %c0_i32 = arith.constant 0 : i32
    %c0_i32_0 = arith.constant 0 : i32
    return %arg0, %c0_i32 : i32, i32
  }
}

</mosaic_0001>

<bundles_post_ra>
// kernel: tpu_custom_call.1
= control target key start
LH: loop header
LB: loop body
LE: loop exit
PB: predicated region body
PF: predicated region fallthrough
CT: control target
= control target key end

     0   :  { %10 = vsyncpa [#allocation3], 0  ;;  %s869_s0 = inlined_call_operand.hbm [shape: f32[32,128], index: 0, kind: input, shape index: {}]   ;;  %s870_s1 = inlined_call_operand.hbm [shape: f32[32,128], index: 1, kind: input, shape index: {}]   ;;  %s871_s2 = inlined_call_operand.hbm [shape: f32[32,128], index: 2, kind: input, shape index: {}]   ;;  %s872_s3 = inlined_call_operand.hbm [shape: f32[32,128], index: 3, kind: input, shape index: {}]   ;;  %s873_s4 = inlined_call_operand.hbm [shape: f32[3,128,128], index: 4, kind: input, shape index: {}]   ;;  %s874_s5 = inlined_call_operand.hbm [shape: f32[32,128], index: 5, kind: output, shape index: {}]  }
   0x1   :  { %11 = vsyncpa [#allocation6], 0 }
   0x2   :  { %12 = vsyncpa [#allocation9], 0 }
   0x3   :  { %13 = vsyncpa [#allocation4], 0  ;;  %s795_s18 = smov [#allocation5]   ;;  %s796_s20 = smov [#allocation8]  }
   0x4   :  { %s31_s19 = sshll.u32 %s795_s18, 4  ;;  %s55_s21 = sshll.u32 %s796_s20, 4  ;;  %s32_s19 = int_to_ptr.vmem [resolvable:$true] %s31_s19  ;;  %s56_s21 = int_to_ptr.vmem [resolvable:$true] %s55_s21 }
   0x5   :  { %s675_s22 = scalar_lea.vmem %s32_s19, 512  ;;  %p680_p1 = scmp.lt.s32.totalorder %s32_s19, %s32_s19 }
   0x6   :  { %p676_p0 = scmp.ne.s32.totalorder %s32_s19, %s675_s22  ;;  %p681_p2 = scmp.lt.s32.totalorder %s675_s22, %s675_s22 }
   0x8   :  { %p682_p3 = por %p681_p2, %p680_p1 }
   0xa   :  { %p683_p4 = pnand %p682_p3, %p676_p0 }
   0xc   :  { %686 = shalt.err (!%p683_p4)
}
   0xd   :  { %s797_s23 = smov 128   ;;  %s798_s24 = smov 8  }
   0xe   :  { %37 = dma.hbm_to_vmem [thread:$0]  %s870_s1, 512, %s32_s19, [#allocation6], %s797_s23, %s797_s23, %s798_s24  }
   0xf   :  { %s695_s27 = scalar_lea.vmem %s56_s21, 512  ;;  %p700_p6 = scmp.lt.s32.totalorder %s56_s21, %s56_s21 }
  0x10   :  { %p696_p5 = scmp.ne.s32.totalorder %s56_s21, %s695_s27  ;;  %p701_p7 = scmp.lt.s32.totalorder %s695_s27, %s695_s27 }
  0x12   :  { %p702_p8 = por %p701_p7, %p700_p6 }
  0x14   :  { %p703_p9 = pnand %p702_p8, %p696_p5 }
  0x16   :  { %706 = shalt.err (!%p703_p9)
}
  0x17   :  { %61 = dma.hbm_to_vmem [thread:$0]  %s872_s3, 512, %s56_s21, [#allocation9], %s797_s23, %s797_s23, %s798_s24  }
  0x18   :  { %s799_s30 = smov [#allocation2]   ;;  %s800_s7 = smov [#allocation7]  }
  0x19   :  { %s19_s6 = sshll.u32 %s799_s30, 4  ;;  %s43_s8 = sshll.u32 %s800_s7, 4  ;;  %s20_s6 = int_to_ptr.vmem [resolvable:$true] %s19_s6  ;;  %s44_s8 = int_to_ptr.vmem [resolvable:$true] %s43_s8 }
  0x1a   :  { %s715_s1 = scalar_lea.vmem %s20_s6, 512  ;;  %p720_p11 = scmp.lt.s32.totalorder %s20_s6, %s20_s6 }
  0x1b   :  { %p716_p10 = scmp.ne.s32.totalorder %s20_s6, %s715_s1  ;;  %p721_p12 = scmp.lt.s32.totalorder %s715_s1, %s715_s1 }
  0x1d   :  { %p722_p13 = por %p721_p12, %p720_p11 }
  0x1f   :  { %p723_p0 = pnand %p722_p13, %p716_p10 }
  0x21   :  { %726 = shalt.err (!%p723_p0)
}
  0x22   :  { %25 = dma.hbm_to_vmem [thread:$0]  %s869_s0, 512, %s20_s6, [#allocation3], %s797_s23, %s797_s23, %s798_s24  }
  0x23   :  { %s735_s3 = scalar_lea.vmem %s44_s8, 512  ;;  %p740_p2 = scmp.lt.s32.totalorder %s44_s8, %s44_s8 }
  0x24   :  { %p736_p1 = scmp.ne.s32.totalorder %s44_s8, %s735_s3  ;;  %p741_p3 = scmp.lt.s32.totalorder %s735_s3, %s735_s3 }
  0x26   :  { %p742_p4 = por %p741_p3, %p740_p2 }
  0x28   :  { %p743_p5 = pnand %p742_p4, %p736_p1 }
  0x2a   :  { %746 = shalt.err (!%p743_p5)
}
  0x2b   :  { %49 = dma.hbm_to_vmem [thread:$0]  %s871_s2, 512, %s44_s8, [#allocation6], %s797_s23, %s797_s23, %s798_s24  }
  0x2c   :  { %s801_s13 = smov [#allocation10]  }
  0x2d   :  { %s67_s14 = sshll.u32 %s801_s13, 4  ;;  %s68_s14 = int_to_ptr.vmem [resolvable:$true] %s67_s14 }
  0x2e   :  { %s755_s15 = scalar_lea.vmem %s68_s14, 6144  ;;  %p760_p7 = scmp.lt.s32.totalorder %s68_s14, %s68_s14 }
  0x2f   :  { %p756_p6 = scmp.ne.s32.totalorder %s68_s14, %s755_s15  ;;  %p761_p8 = scmp.lt.s32.totalorder %s755_s15, %s755_s15 }
  0x31   :  { %p762_p9 = por %p761_p8, %p760_p7 }
  0x33   :  { %p763_p10 = pnand %p762_p9, %p756_p6 }
  0x35   :  { %766 = shalt.err (!%p763_p10)
}
  0x36   :  { %73 = dma.hbm_to_vmem [thread:$0]  %s873_s4, 6144, %s68_s14, [#allocation9], %s797_s23, %s797_s23, %s798_s24  }
  0x37   :  { %787 = dma.done.wait [#allocation3], 512  }
  0x38   :  { %788 = vsyncadd [#allocation3], 4294966784 }
  0x39   :  { %789 = dma.done.wait [#allocation6], 1024  }
  0x3a   :  { %790 = vsyncadd [#allocation6], 4294966272 }
  0x3b   :  { %791 = dma.done.wait [#allocation9], 6656  }
  0x3c   :  { %792 = vsyncadd [#allocation9], 4294960640  ;;  %v129_v0 = vld [vmem:[#allocation10 + $0xf8] sm:$0xff]  ;;  %v128_v2 = vld [vmem:[#allocation10 + $0xf0] sm:$0xff]  ;;  %s802_s2 = smov [#allocation11]  }
  0x3d   :  { %v108_v1 = vld [vmem:[#allocation10 + $0x78] sm:$0xff]  ;;  %505 = vmatprep.subr.mxu0 %v129_v0  ;;  %v107_v3 = vld [vmem:[#allocation10 + $0x70] sm:$0xff]  ;;  %v127_v4 = vld [vmem:[#allocation10 + $0xe8] sm:$0xff]  ;;  %s431_s4 = sshll.u32 %s802_s2, 4  ;;  %s432_s4 = int_to_ptr.vmem [resolvable:$true] %s431_s4 }
  0x3e   :  { %543 = vmatprep.subr.mxu1 %v108_v1  ;;  %506 = vmatpush3.msra.mxu0 %v129_v0  ;;  %v106_v5 = vld [vmem:[#allocation10 + $0x68] sm:$0xff]  ;;  %v126_v6 = vld [vmem:[#allocation10 + $0xe0] sm:$0xff]  ;;  %v125_v8 = vld [vmem:[#allocation10 + $0xd8] sm:$0xff]  ;;  %s767_s17 = scalar_lea.vmem %s432_s4, 512  ;;  %p772_p12 = scmp.lt.s32.totalorder %s432_s4, %s432_s4 }
  0x3f   :  { %544 = vmatpush3.msra.mxu1 %v108_v1  ;;  %507 = vmatprep.subr.mxu0 %v128_v2  ;;  %v105_v7 = vld [vmem:[#allocation10 + $0x60] sm:$0xff]  ;;  %v104_v9 = vld [vmem:[#allocation10 + $0x58] sm:$0xff]  ;;  %v124_v10 = vld [vmem:[#allocation10 + $0xd0] sm:$0xff]  ;;  %p768_p11 = scmp.ne.s32.totalorder %s432_s4, %s767_s17  ;;  %p773_p13 = scmp.lt.s32.totalorder %s767_s17, %s767_s17 }
  0x40   :  { %545 = vmatprep.subr.mxu1 %v107_v3  ;;  %508 = vmatpush3.msra.mxu0 %v128_v2  ;;  %v103_v11 = vld [vmem:[#allocation10 + $0x50] sm:$0xff]  ;;  %v123_v12 = vld [vmem:[#allocation10 + $0xc8] sm:$0xff]  ;;  %v122_v14 = vld [vmem:[#allocation10 + $0xc0] sm:$0xff] }
  0x41   :  { %546 = vmatpush3.msra.mxu1 %v107_v3  ;;  %509 = vmatprep.subr.mxu0 %v127_v4  ;;  %v102_v13 = vld [vmem:[#allocation10 + $0x48] sm:$0xff]  ;;  %v101_v15 = vld [vmem:[#allocation10 + $0x40] sm:$0xff]  ;;  %v121_v16 = vld [vmem:[#allocation10 + $0xb8] sm:$0xff]  ;;  %p774_p0 = por %p773_p13, %p772_p12 }
  0x42   :  { %547 = vmatprep.subr.mxu1 %v106_v5  ;;  %510 = vmatpush3.msra.mxu0 %v127_v4  ;;  %v100_v17 = vld [vmem:[#allocation10 + $0x38] sm:$0xff]  ;;  %v120_v18 = vld [vmem:[#allocation10 + $0xb0] sm:$0xff]  ;;  %v119_v20 = vld [vmem:[#allocation10 + $0xa8] sm:$0xff] }
  0x43   :  { %548 = vmatpush3.msra.mxu1 %v106_v5  ;;  %511 = vmatprep.subr.mxu0 %v126_v6  ;;  %v99_v19 = vld [vmem:[#allocation10 + $0x30] sm:$0xff]  ;;  %v98_v21 = vld [vmem:[#allocation10 + $0x28] sm:$0xff]  ;;  %v118_v22 = vld [vmem:[#allocation10 + $0xa0] sm:$0xff]  ;;  %p775_p1 = pnand %p774_p0, %p768_p11 }
  0x44   :  { %549 = vmatprep.subr.mxu1 %v105_v7  ;;  %512 = vmatpush3.msra.mxu0 %v126_v6  ;;  %v97_v23 = vld [vmem:[#allocation10 + $0x20] sm:$0xff]  ;;  %v117_v24 = vld [vmem:[#allocation10 + $0x98] sm:$0xff]  ;;  %v116_v26 = vld [vmem:[#allocation10 + $0x90] sm:$0xff] }
  0x45   :  { %550 = vmatpush3.msra.mxu1 %v105_v7  ;;  %513 = vmatprep.subr.mxu0 %v125_v8  ;;  %v96_v25 = vld [vmem:[#allocation10 + $0x18] sm:$0xff]  ;;  %v95_v27 = vld [vmem:[#allocation10 + $0x10] sm:$0xff]  ;;  %v115_v28 = vld [vmem:[#allocation10 + $0x88] sm:$0xff] }
  0x46   :  { %551 = vmatprep.subr.mxu1 %v104_v9  ;;  %514 = vmatpush3.msra.mxu0 %v125_v8  ;;  %v94_v29 = vld [vmem:[#allocation10 + $0x8] sm:$0xff]  ;;  %v114_v30 = vld [vmem:[#allocation10 + $0x80] sm:$0xff]  ;;  %v320_v36 = vld [vmem:[#allocation10 + $0x178] sm:$0xff] }
  0x47   :  { %552 = vmatpush3.msra.mxu1 %v104_v9  ;;  %515 = vmatprep.subr.mxu0 %v124_v10  ;;  %v93_v31 = vld [vmem:[#allocation10] sm:$0xff]  ;;  %v110_v34 = vld [vmem:[#allocation7 + $0x8] sm:$0xff]  ;;  %v319_v37 = vld [vmem:[#allocation10 + $0x170] sm:$0xff] }
  0x48   :  { %553 = vmatprep.subr.mxu1 %v103_v11  ;;  %516 = vmatpush3.msra.mxu0 %v124_v10  ;;  %v109_v32 = vld [vmem:[#allocation7] sm:$0xff]  ;;  %v90_v35 = vld [vmem:[#allocation5 + $0x8] sm:$0xff]  ;;  %v316_v40 = vld [vmem:[#allocation10 + $0x158] sm:$0xff] }
  0x49   :  { %554 = vmatpush3.msra.mxu1 %v103_v11  ;;  %517 = vmatprep.subr.mxu0 %v123_v12  ;;  %v89_v33 = vld [vmem:[#allocation5] sm:$0xff]  ;;  %v318_v38 = vld [vmem:[#allocation10 + $0x168] sm:$0xff]  ;;  %v315_v41 = vld [vmem:[#allocation10 + $0x150] sm:$0xff] }
  0x4a   :  { %555 = vmatprep.subr.mxu1 %v102_v13  ;;  %518 = vmatpush3.msra.mxu0 %v123_v12  ;;  %v317_v39 = vld [vmem:[#allocation10 + $0x160] sm:$0xff]  ;;  %v314_v42 = vld [vmem:[#allocation10 + $0x148] sm:$0xff]  ;;  %v312_v44 = vld [vmem:[#allocation10 + $0x138] sm:$0xff] }
  0x4b   :  { %556 = vmatpush3.msra.mxu1 %v102_v13  ;;  %519 = vmatprep.subr.mxu0 %v122_v14  ;;  %v313_v43 = vld [vmem:[#allocation10 + $0x140] sm:$0xff]  ;;  %v311_v45 = vld [vmem:[#allocation10 + $0x130] sm:$0xff]  ;;  %v310_v46 = vld [vmem:[#allocation10 + $0x128] sm:$0xff] }
  0x4c   :  { %557 = vmatprep.subr.mxu1 %v101_v15  ;;  %520 = vmatpush3.msra.mxu0 %v122_v14  ;;  %v309_v47 = vld [vmem:[#allocation10 + $0x120] sm:$0xff]  ;;  %v308_v48 = vld [vmem:[#allocation10 + $0x118] sm:$0xff]  ;;  %v111_v49 = vld [vmem:[#allocation7 + $0x10] sm:$0xff] }
  0x4d   :  { %558 = vmatpush3.msra.mxu1 %v101_v15  ;;  %521 = vmatprep.subr.mxu0 %v121_v16  ;;  %v91_v50 = vld [vmem:[#allocation5 + $0x10] sm:$0xff]  ;;  %v112_v51 = vld [vmem:[#allocation7 + $0x18] sm:$0xff]  ;;  %v306_v54 = vld [vmem:[#allocation10 + $0x108] sm:$0xff] }
  0x4e   :  { %559 = vmatprep.subr.mxu1 %v100_v17  ;;  %522 = vmatpush3.msra.mxu0 %v121_v16  ;;  %v92_v52 = vld [vmem:[#allocation5 + $0x18] sm:$0xff]  ;;  %v307_v53 = vld [vmem:[#allocation10 + $0x110] sm:$0xff]  ;;  %v305_v55 = vld [vmem:[#allocation10 + $0x100] sm:$0xff] }
  0x4f   :  { %560 = vmatpush3.msra.mxu1 %v100_v17  ;;  %523 = vmatprep.subr.mxu0 %v120_v18  ;;  %v300_v56 = vld [vmem:[#allocation8] sm:$0xff]  ;;  %v302_v57 = vld [vmem:[#allocation8 + $0x10] sm:$0xff]  ;;  %v301_v58 = vld [vmem:[#allocation8 + $0x8] sm:$0xff] }
  0x50   :  { %561 = vmatprep.subr.mxu1 %v99_v19  ;;  %524 = vmatpush3.msra.mxu0 %v120_v18  ;;  %v303_v59 = vld [vmem:[#allocation8 + $0x18] sm:$0xff]  ;;  %v411_v7 = vld [vmem:[#allocation2 + $0x8] sm:$0xff]  ;;  %v410_v15 = vld [vmem:[#allocation2] sm:$0xff] }
  0x51   :  { %562 = vmatpush3.msra.mxu1 %v99_v19  ;;  %525 = vmatprep.subr.mxu0 %v119_v20  ;;  %v413_v9 = vld [vmem:[#allocation2 + $0x18] sm:$0xff]  ;;  %v412_v17 = vld [vmem:[#allocation2 + $0x10] sm:$0xff] }
  0x52   :  { %563 = vmatprep.subr.mxu1 %v98_v21  ;;  %526 = vmatpush3.msra.mxu0 %v119_v20 }
  0x53   :  { %564 = vmatpush3.msra.mxu1 %v98_v21  ;;  %527 = vmatprep.subr.mxu0 %v118_v22 }
  0x54   :  { %565 = vmatprep.subr.mxu1 %v97_v23  ;;  %528 = vmatpush3.msra.mxu0 %v118_v22 }
  0x55   :  { %566 = vmatpush3.msra.mxu1 %v97_v23  ;;  %529 = vmatprep.subr.mxu0 %v117_v24 }
  0x56   :  { %567 = vmatprep.subr.mxu1 %v96_v25  ;;  %530 = vmatpush3.msra.mxu0 %v117_v24 }
  0x57   :  { %568 = vmatpush3.msra.mxu1 %v96_v25  ;;  %531 = vmatprep.subr.mxu0 %v116_v26 }
  0x58   :  { %569 = vmatprep.subr.mxu1 %v95_v27  ;;  %532 = vmatpush3.msra.mxu0 %v116_v26 }
  0x59   :  { %570 = vmatpush3.msra.mxu1 %v95_v27  ;;  %533 = vmatprep.subr.mxu0 %v115_v28 }
  0x5a   :  { %571 = vmatprep.subr.mxu1 %v94_v29  ;;  %534 = vmatpush3.msra.mxu0 %v115_v28 }
  0x5b   :  { %572 = vmatpush3.msra.mxu1 %v94_v29  ;;  %535 = vmatprep.subr.mxu0 %v114_v30 }
  0x5c   :  { %573 = vmatprep.subr.mxu1 %v93_v31  ;;  %536 = vmatpush3.msra.mxu0 %v114_v30 }
  0x5d   :  { %537 = vmatprep.mubr.f32.mxu0 %v109_v32  ;;  %574 = vmatpush3.msra.mxu1 %v93_v31 }
  0x5e   :  { %575 = vmatprep.mubr.f32.mxu1 %v89_v33  ;;  %538 = vmatmul.mubr.f32.vlgmr.msra.gmra.mxu0 %v110_v34 }
  0x5f   :  { %576 = vmatmul.mubr.f32.vlgmr.msra.gmra.mxu1 %v90_v35  ;;  %581 = vmatprep.subr.mxu0 %v320_v36 }
  0x60   :  { %619 = vmatprep.subr.mxu1 %v320_v36  ;;  %582 = vmatpush3.msra.mxu0 %v320_v36 }
  0x61   :  { %635 = vmatpush3.msra.mxu1 %v320_v36  ;;  %583 = vmatprep.subr.mxu0 %v319_v37 }
  0x62   :  { %620 = vmatprep.subr.mxu1 %v319_v37  ;;  %584 = vmatpush3.msra.mxu0 %v319_v37 }
  0x63   :  { %636 = vmatpush3.msra.mxu1 %v319_v37  ;;  %585 = vmatprep.subr.mxu0 %v318_v38 }
  0x64   :  { %621 = vmatprep.subr.mxu1 %v318_v38  ;;  %586 = vmatpush3.msra.mxu0 %v318_v38 }
  0x65   :  { %637 = vmatpush3.msra.mxu1 %v318_v38  ;;  %587 = vmatprep.subr.mxu0 %v317_v39 }
  0x66   :  { %622 = vmatprep.subr.mxu1 %v317_v39  ;;  %588 = vmatpush3.msra.mxu0 %v317_v39 }
  0x67   :  { %638 = vmatpush3.msra.mxu1 %v317_v39  ;;  %589 = vmatprep.subr.mxu0 %v316_v40 }
  0x68   :  { %623 = vmatprep.subr.mxu1 %v316_v40  ;;  %590 = vmatpush3.msra.mxu0 %v316_v40 }
  0x69   :  { %639 = vmatpush3.msra.mxu1 %v316_v40  ;;  %591 = vmatprep.subr.mxu0 %v315_v41 }
  0x6a   :  { %624 = vmatprep.subr.mxu1 %v315_v41  ;;  %592 = vmatpush3.msra.mxu0 %v315_v41 }
  0x6b   :  { %640 = vmatpush3.msra.mxu1 %v315_v41  ;;  %593 = vmatprep.subr.mxu0 %v314_v42 }
  0x6c   :  { %625 = vmatprep.subr.mxu1 %v314_v42  ;;  %594 = vmatpush3.msra.mxu0 %v314_v42 }
  0x6d   :  { %641 = vmatpush3.msra.mxu1 %v314_v42  ;;  %595 = vmatprep.subr.mxu0 %v313_v43 }
  0x6e   :  { %626 = vmatprep.subr.mxu1 %v313_v43  ;;  %596 = vmatpush3.msra.mxu0 %v313_v43 }
  0x6f   :  { %642 = vmatpush3.msra.mxu1 %v313_v43  ;;  %597 = vmatprep.subr.mxu0 %v312_v44 }
  0x70   :  { %627 = vmatprep.subr.mxu1 %v312_v44  ;;  %598 = vmatpush3.msra.mxu0 %v312_v44 }
  0x71   :  { %643 = vmatpush3.msra.mxu1 %v312_v44  ;;  %599 = vmatprep.subr.mxu0 %v311_v45 }
  0x72   :  { %628 = vmatprep.subr.mxu1 %v311_v45  ;;  %600 = vmatpush3.msra.mxu0 %v311_v45 }
  0x73   :  { %644 = vmatpush3.msra.mxu1 %v311_v45  ;;  %601 = vmatprep.subr.mxu0 %v310_v46 }
  0x74   :  { %629 = vmatprep.subr.mxu1 %v310_v46  ;;  %602 = vmatpush3.msra.mxu0 %v310_v46 }
  0x75   :  { %645 = vmatpush3.msra.mxu1 %v310_v46  ;;  %603 = vmatprep.subr.mxu0 %v309_v47 }
  0x76   :  { %630 = vmatprep.subr.mxu1 %v309_v47  ;;  %604 = vmatpush3.msra.mxu0 %v309_v47 }
  0x77   :  { %646 = vmatpush3.msra.mxu1 %v309_v47  ;;  %605 = vmatprep.subr.mxu0 %v308_v48 }
  0x78   :  { %631 = vmatprep.subr.mxu1 %v308_v48  ;;  %540 = vmatprep.mubr.f32.mxu0 %v111_v49 }
  0x79   :  { %578 = vmatprep.mubr.f32.mxu1 %v91_v50  ;;  %606 = vmatpush3.msra.mxu0 %v308_v48 }
  0x7a   :  { %647 = vmatpush3.msra.mxu1 %v308_v48  ;;  %541 = vmatmul.mubr.f32.gmra.mxu0 %v112_v51 }
  0x7b   :  { %579 = vmatmul.mubr.f32.gmra.mxu1 %v92_v52  ;;  %607 = vmatprep.subr.mxu0 %v307_v53 }
  0x7c   :  { %632 = vmatprep.subr.mxu1 %v307_v53  ;;  %608 = vmatpush3.msra.mxu0 %v307_v53 }
  0x7d   :  { %648 = vmatpush3.msra.mxu1 %v307_v53  ;;  %609 = vmatprep.subr.mxu0 %v306_v54 }
  0x7e   :  { %633 = vmatprep.subr.mxu1 %v306_v54  ;;  %610 = vmatpush3.msra.mxu0 %v306_v54 }
  0x7f   :  { %649 = vmatpush3.msra.mxu1 %v306_v54  ;;  %611 = vmatprep.subr.mxu0 %v305_v55 }
  0x80   :  { %634 = vmatprep.subr.mxu1 %v305_v55  ;;  %612 = vmatpush3.msra.mxu0 %v305_v55 }
  0x81   :  { %650 = vmatpush3.msra.mxu1 %v305_v55  ;;  %613 = vmatprep.mubr.f32.mxu0 %v300_v56 }
  0x82   :  { %616 = vmatprep.mubr.f32.mxu1 %v302_v57  ;;  %614 = vmatmul.mubr.f32.vlgmr.msra.gmra.mxu0 %v301_v58 }
  0x83   :  { %617 = vmatmul.mubr.f32.vlgmr.msra.gmra.mxu1 %v303_v59 }
 0x11e   :  { %v539_v60 = vpop.f32.mrf.mxu0 }
 0x11f   :  { %v577_v61 = vpop.f32.mrf.mxu1 }
 0x120   :  { %v196_v62 = vpop.f32.mrf.mxu0  ;;  %v287_v4 = vadd.f32 %v577_v61, %v539_v60 }
 0x121   :  { %v281_v63 = vpop.f32.mrf.mxu1 }
 0x122   :  { %v282_v10 = vadd.f32 %v281_v63, %v196_v62 }
 0x13a   :  { %v542_v0 = vpop.f32.mrf.mxu0 }
 0x13b   :  { %v580_v1 = vpop.f32.mrf.mxu1 }
 0x13c   :  { %v206_v2 = vpop.f32.mrf.mxu0  ;;  %v297_v5 = vadd.f32 %v580_v1, %v542_v0 }
 0x13d   :  { %v291_v3 = vpop.f32.mrf.mxu1 }
 0x13e   :  { %v292_v11 = vadd.f32 %v291_v3, %v206_v2 }
 0x142   :  { %v615_v6 = vpop.f32.mrf.mxu0 }
 0x143   :  { %v618_v8 = vpop.f32.mrf.mxu1  ;;  %v407_v12 = vadd.f32 %v615_v6, %v287_v4 }
 0x144   :  { %v409_v13 = vadd.f32 %v618_v8, %v297_v5  ;;  %v387_v14 = vpop.f32.mrf.mxu0 }
 0x145   :  { %v397_v16 = vpop.f32.mrf.mxu1  ;;  %v415_v18 = vmul.f32 %v411_v7, %v407_v12  ;;  %v406_v20 = vadd.f32 %v387_v14, %v282_v10 }
 0x146   :  { %v417_v19 = vmul.f32 %v413_v9, %v409_v13  ;;  %v408_v21 = vadd.f32 %v397_v16, %v292_v11 }
 0x147   :  { %659 = vtanh.f32 %v415_v18  ;;  %v414_v22 = vmul.f32 %v410_v15, %v406_v20 }
 0x148   :  { %v416_v23 = vmul.f32 %v412_v17, %v408_v21  ;;  %661 = vtanh.f32 %v417_v19 }
 0x149   :  { %663 = vtanh.f32 %v414_v22 }
 0x14a   :  { %665 = vtanh.f32 %v416_v23 }
 0x154   :  { %v660_v24 = vpop.eup %659 }
 0x155   :  { %v662_v25 = vpop.eup %661  ;;  %423 = vst [vmem:[#allocation11 + $0x8] sm:$0xff] %v660_v24 }
 0x156   :  { %v664_v26 = vpop.eup %663  ;;  %425 = vst [vmem:[#allocation11 + $0x18] sm:$0xff] %v662_v25 }
 0x157   :  { %v666_v27 = vpop.eup %665  ;;  %422 = vst [vmem:[#allocation11] sm:$0xff] %v664_v26 }
 0x158   :  { %424 = vst [vmem:[#allocation11 + $0x10] sm:$0xff] %v666_v27 }
 0x159   :  { %778 = shalt.err (!%p775_p1)
}
 0x15a   :  { %437 = dma.vmem_to_hbm [thread:$0]  %s432_s4, 512, %s874_s5, [#allocation4], %s797_s23, %s797_s23, %s798_s24  }
 0x15b   :  { %793 = dma.done.wait [#allocation4], 512  }
 0x15c   :  { %794 = vsyncadd [#allocation4], 4294966784 }
 0x15d   :  { %441 = vsyncpa [#allocation3], 1 }
 0x15e   :  { %442 = vsyncpa [#allocation6], 1 }
 0x15f   :  { %443 = vsyncpa [#allocation9], 1 }
 0x160   :  { %444 = vsyncpa [#allocation4], 1 }

</bundles_post_ra>
